<compile_context>
chip_gen: v7x
topology: tpu7x:2x2x1
jax: 0.10.0
libtpu: 0.0.40
codegen_flags: <defaults>
</compile_context>

<pallas_src>
import jax
import jax.numpy as jnp
from jax.experimental import pallas as pl
from jax.experimental.pallas import tpu as pltpu

LANE = 128
SUBLANE = 8
HIDDEN_DIMS = (20, 10, 20)  # logical r1/r2/r3 output widths (r4 -> movie_no)


def _round_up(n, m):
    return ((n + m - 1) // m) * m


# ---------------------------------------------------------------------------
# Kernel: one (TB, M_pad) batch tile through all four layers.
# ---------------------------------------------------------------------------
def sae_kernel(x_ref,
               w1_ref, b1_ref,
               w2_ref, b2_ref,
               w3_ref, b3_ref,
               w4_ref, b4_ref,
               o_ref):
    # Layer 1: (TB, Mp) @ (Mp, 128) -> f32, +bias, sigmoid (all f32 elementwise)
    h = jnp.dot(x_ref[...], w1_ref[...], preferred_element_type=jnp.float32)
    h = jax.nn.sigmoid(h + b1_ref[...])
    # Layer 2: (TB, 128) @ (128, 128)
    h = jnp.dot(h.astype(jnp.bfloat16), w2_ref[...], preferred_element_type=jnp.float32)
    h = jax.nn.sigmoid(h + b2_ref[...])
    # Layer 3: (TB, 128) @ (128, 128)
    h = jnp.dot(h.astype(jnp.bfloat16), w3_ref[...], preferred_element_type=jnp.float32)
    h = jax.nn.sigmoid(h + b3_ref[...])
    # Layer 4 (decoder, no activation): (TB, 128) @ (128, Mp)
    h = jnp.dot(h.astype(jnp.bfloat16), w4_ref[...], preferred_element_type=jnp.float32)
    o_ref[...] = (h + b4_ref[...]).astype(o_ref.dtype)


# ---------------------------------------------------------------------------
# Parameter prep: zero-pad to lane-dense shapes, weights -> bf16, biases -> f32.
# Padding is exact: padded hidden lanes get preact 0 -> sigmoid 0.5, but the next
# layer's weight rows for those lanes are zero, so they contribute nothing; padded
# output lanes are zero and get sliced off.
# ---------------------------------------------------------------------------
def prepare_params(params, movie_no):
    mp = _round_up(movie_no, LANE)
    hp = LANE  # padded hidden width for all three hidden layers
    logical = [(movie_no, HIDDEN_DIMS[0]),
               (HIDDEN_DIMS[0], HIDDEN_DIMS[1]),
               (HIDDEN_DIMS[1], HIDDEN_DIMS[2]),
               (HIDDEN_DIMS[2], movie_no)]
    padded = [(mp, hp), (hp, hp), (hp, hp), (hp, mp)]
    prepared = {}
    for i, ((fi, fo), (pfi, pfo)) in enumerate(zip(logical, padded), start=1):
        w = jnp.zeros((pfi, pfo), jnp.bfloat16)
        w = w.at[:fi, :fo].set(params[f"w{i}"].astype(jnp.bfloat16))
        b = jnp.zeros((1, pfo), jnp.float32)
        b = b.at[:, :fo].set(params[f"b{i}"].astype(jnp.float32))
        prepared[f"w{i}"] = w
        prepared[f"b{i}"] = b
    return prepared


# ---------------------------------------------------------------------------
# Wrapper: batch-tiled pallas_call.
# ---------------------------------------------------------------------------
def sae_forward(x, prepared, *, tile_batch=512):
    batch, movie_no = x.shape
    mp = prepared["w1"].shape[0]          # padded movie_no
    hp = prepared["w1"].shape[1]          # padded hidden width (128)

    # Batch tile: multiple of 8 sublanes, no larger than needed.
    tb = _round_up(min(tile_batch, batch), SUBLANE)
    bp = _round_up(batch, tb)
    n_blocks = bp // tb

    # Pad + cast input (rows/lanes beyond the logical extent are zero; sliced off below).
    xp = jnp.pad(x.astype(jnp.bfloat16), ((0, bp - batch), (0, mp - movie_no)))

    # BlockSpecs: x/out tiled over batch; weights/biases resident (constant index_map).
    x_spec = pl.BlockSpec((tb, mp), lambda i: (i, 0))
    out_spec = pl.BlockSpec((tb, mp), lambda i: (i, 0))

    def const_spec(arr):
        return pl.BlockSpec(arr.shape, lambda i: (0,) * arr.ndim)

    param_order = []
    param_specs = []
    for li in range(1, 5):
        for name in (f"w{li}", f"b{li}"):
            param_order.append(prepared[name])
            param_specs.append(const_spec(prepared[name]))

    weight_bytes = sum(int(p.size) * p.dtype.itemsize for p in param_order)

    # VMEM budget: double-buffered x (bf16) + out (f32) tiles, resident params,
    # f32 intermediates, headroom. Capped at 48 MiB so it fits v7x's 64 MiB VMEM.
    vmem_need = (2 * tb * mp * 2          # x tile, double-buffered, bf16
                 + 2 * tb * mp * 4        # out tile, double-buffered, f32
                 + weight_bytes           # resident weights/biases
                 + 2 * tb * mp * 4        # f32 layer-4 intermediate + slack
                 + 2 * tb * hp * 4        # hidden activations
                 + (4 << 20))             # headroom
    vmem_limit = int(min(max(vmem_need, 32 << 20), 48 << 20))

    flops = 2 * bp * (mp * hp + hp * hp + hp * hp + hp * mp)
    transcendentals = bp * 3 * hp
    bytes_accessed = bp * mp * (2 + 4) + weight_bytes

    out = pl.pallas_call(
        sae_kernel,
        out_shape=jax.ShapeDtypeStruct((bp, mp), jnp.float32),
        grid=(n_blocks,),
        in_specs=[x_spec] + param_specs,
        out_specs=out_spec,
        compiler_params=pltpu.CompilerParams(
            dimension_semantics=("parallel",),
            vmem_limit_bytes=vmem_limit),
        cost_estimate=pl.CostEstimate(flops=flops,
                                      transcendentals=transcendentals,
                                      bytes_accessed=bytes_accessed),
    )(xp, *param_order)

    return out[:batch, :movie_no]


# ---------------------------------------------------------------------------
# Init + references.
# ---------------------------------------------------------------------------
def init_params(key, movie_no):
    """nn.Linear-style init (uniform +-1/sqrt(fan_in)); weights stored as
    (in_features, out_features) so x @ W matches PyTorch's x @ W.T."""
    dims = [(movie_no, HIDDEN_DIMS[0]),
            (HIDDEN_DIMS[0], HIDDEN_DIMS[1]),
            (HIDDEN_DIMS[1], HIDDEN_DIMS[2]),
            (HIDDEN_DIMS[2], movie_no)]
    params = {}
    keys = jax.random.split(key, 2 * len(dims))
    for i, (fan_in, fan_out) in enumerate(dims):
        bound = 1.0 / jnp.sqrt(fan_in)
        params[f"w{i + 1}"] = jax.random.uniform(
            keys[2 * i], (fan_in, fan_out), minval=-bound, maxval=bound, dtype=jnp.float32)
        params[f"b{i + 1}"] = jax.random.uniform(
            keys[2 * i + 1], (1, fan_out), minval=-bound, maxval=bound, dtype=jnp.float32)
    return params


def sae_reference_f32(x, params):
    h = jax.nn.sigmoid(x @ params["w1"] + params["b1"])
    h = jax.nn.sigmoid(h @ params["w2"] + params["b2"])
    h = jax.nn.sigmoid(h @ params["w3"] + params["b3"])
    return h @ params["w4"] + params["b4"]


def sae_reference_matched(x, params):
    """Reference with the same precision policy as the kernel
    (bf16 matmul operands, f32 accumulation, f32 bias/sigmoid)."""
    def mm(a, w):
        return jnp.dot(a.astype(jnp.bfloat16), w.astype(jnp.bfloat16),
                       preferred_element_type=jnp.float32)
    h = jax.nn.sigmoid(mm(x, params["w1"]) + params["b1"])
    h = jax.nn.sigmoid(mm(h, params["w2"]) + params["b2"])
    h = jax.nn.sigmoid(mm(h, params["w3"]) + params["b3"])
    return mm(h, params["w4"]) + params["b4"]


if __name__ == "__main__":
    key = jax.random.PRNGKey(0)
    k_x1, k_x2, k_p = jax.random.split(key, 3)

    movie_no = 64          # small synthetic "number of movies"
    params = init_params(k_p, movie_no)
    prepared = prepare_params(params, movie_no)

    # Test 1: single-block grid (batch=8).
    x1 = jax.random.uniform(k_x1, (8, movie_no), minval=0.0, maxval=5.0, dtype=jnp.float32)
    out1 = jax.block_until_ready(sae_forward(x1, prepared))
    assert out1.shape == (8, movie_no)
    assert jnp.allclose(out1, sae_reference_matched(x1, params), atol=2e-3, rtol=2e-3), \
        "mismatch vs matched-precision reference (test 1)"
    assert jnp.allclose(out1, sae_reference_f32(x1, params), atol=1e-1, rtol=1e-1), \
        "mismatch vs f32 reference beyond bf16 tolerance (test 1)"

    # Test 2: multi-block grid with batch padding (batch=50, tile=16 -> grid=(4,)).
    x2 = jax.random.uniform(k_x2, (50, movie_no), minval=0.0, maxval=5.0, dtype=jnp.float32)
    out2 = jax.block_until_ready(sae_forward(x2, prepared, tile_batch=16))
    assert out2.shape == (50, movie_no)
    assert jnp.allclose(out2, sae_reference_matched(x2, params), atol=2e-3, rtol=2e-3), \
        "mismatch vs matched-precision reference (test 2)"
    assert jnp.allclose(out2, sae_reference_f32(x2, params), atol=1e-1, rtol=1e-1), \
        "mismatch vs f32 reference beyond bf16 tolerance (test 2)"

    print("KERNEL_OK")
</pallas_src>

<mosaic_0001>
module attributes {stable_mosaic.version = 11 : i64} {
  func.func @sae_kernel(%arg0: i32, %arg1: memref<8x128xbf16, #tpu.memory_space<vmem>>, %arg2: memref<128x128xbf16, #tpu.memory_space<vmem>>, %arg3: memref<1x128xf32, #tpu.memory_space<vmem>>, %arg4: memref<128x128xbf16, #tpu.memory_space<vmem>>, %arg5: memref<1x128xf32, #tpu.memory_space<vmem>>, %arg6: memref<128x128xbf16, #tpu.memory_space<vmem>>, %arg7: memref<1x128xf32, #tpu.memory_space<vmem>>, %arg8: memref<128x128xbf16, #tpu.memory_space<vmem>>, %arg9: memref<1x128xf32, #tpu.memory_space<vmem>>, %arg10: memref<8x128xf32, #tpu.memory_space<vmem>>) attributes {dimension_semantics = [#tpu.dimension_semantics<parallel>], iteration_bounds = array<i64: 1>, scalar_prefetch = 0 : i64, scratch_operands = 0 : i64, tpu.core_type = #tpu.core_type<tc>, window_params = [{transform_indices = @transform_0, window_bounds = array<i64: 8, 128>}, {pipeline_mode = #tpu.pipeline_mode<synchronous>, transform_indices = @transform_1, window_bounds = array<i64: 128, 128>}, {pipeline_mode = #tpu.pipeline_mode<synchronous>, transform_indices = @transform_2, window_bounds = array<i64: 1, 128>}, {pipeline_mode = #tpu.pipeline_mode<synchronous>, transform_indices = @transform_3, window_bounds = array<i64: 128, 128>}, {pipeline_mode = #tpu.pipeline_mode<synchronous>, transform_indices = @transform_4, window_bounds = array<i64: 1, 128>}, {pipeline_mode = #tpu.pipeline_mode<synchronous>, transform_indices = @transform_5, window_bounds = array<i64: 128, 128>}, {pipeline_mode = #tpu.pipeline_mode<synchronous>, transform_indices = @transform_6, window_bounds = array<i64: 1, 128>}, {pipeline_mode = #tpu.pipeline_mode<synchronous>, transform_indices = @transform_7, window_bounds = array<i64: 128, 128>}, {pipeline_mode = #tpu.pipeline_mode<synchronous>, transform_indices = @transform_8, window_bounds = array<i64: 1, 128>}, {transform_indices = @transform_9, window_bounds = array<i64: 8, 128>}]} {
    %c0 = arith.constant 0 : index
    %c0_0 = arith.constant 0 : index
    %0 = vector.load %arg1[%c0, %c0_0] : memref<8x128xbf16, #tpu.memory_space<vmem>>, vector<8x128xbf16>
    %c0_1 = arith.constant 0 : index
    %c0_2 = arith.constant 0 : index
    %1 = vector.load %arg2[%c0_1, %c0_2] : memref<128x128xbf16, #tpu.memory_space<vmem>>, vector<128x128xbf16>
    %cst = arith.constant dense<0.000000e+00> : vector<8x128xf32>
    %2 = tpu.matmul %0, %1, %cst {dimension_numbers = #tpu.dot_dimension_numbers<[1], [0], [0], [1], [0, 0, 1, 1], [], []>} : vector<8x128xbf16>, vector<128x128xbf16>, vector<8x128xf32> -> vector<8x128xf32>
    %c0_3 = arith.constant 0 : index
    %c0_4 = arith.constant 0 : index
    %3 = vector.load %arg3[%c0_3, %c0_4] : memref<1x128xf32, #tpu.memory_space<vmem>>, vector<1x128xf32>
    %4 = vector.broadcast %3 : vector<1x128xf32> to vector<8x128xf32>
    %5 = arith.addf %2, %4 : vector<8x128xf32>
    %6 = arith.negf %5 : vector<8x128xf32>
    %7 = math.exp %6 : vector<8x128xf32>
    %cst_5 = arith.constant 1.000000e+00 : f32
    %8 = vector.broadcast %cst_5 : f32 to vector<8x128xf32>
    %9 = arith.addf %8, %7 : vector<8x128xf32>
    %10 = arith.divf %8, %9 : vector<8x128xf32>
    %11 = arith.truncf %10 : vector<8x128xf32> to vector<8x128xbf16>
    %c0_6 = arith.constant 0 : index
    %c0_7 = arith.constant 0 : index
    %12 = vector.load %arg4[%c0_6, %c0_7] : memref<128x128xbf16, #tpu.memory_space<vmem>>, vector<128x128xbf16>
    %cst_8 = arith.constant dense<0.000000e+00> : vector<8x128xf32>
    %13 = tpu.matmul %11, %12, %cst_8 {dimension_numbers = #tpu.dot_dimension_numbers<[1], [0], [0], [1], [0, 0, 1, 1], [], []>} : vector<8x128xbf16>, vector<128x128xbf16>, vector<8x128xf32> -> vector<8x128xf32>
    %c0_9 = arith.constant 0 : index
    %c0_10 = arith.constant 0 : index
    %14 = vector.load %arg5[%c0_9, %c0_10] : memref<1x128xf32, #tpu.memory_space<vmem>>, vector<1x128xf32>
    %15 = vector.broadcast %14 : vector<1x128xf32> to vector<8x128xf32>
    %16 = arith.addf %13, %15 : vector<8x128xf32>
    %17 = arith.negf %16 : vector<8x128xf32>
    %18 = math.exp %17 : vector<8x128xf32>
    %cst_11 = arith.constant 1.000000e+00 : f32
    %19 = vector.broadcast %cst_11 : f32 to vector<8x128xf32>
    %20 = arith.addf %19, %18 : vector<8x128xf32>
    %21 = arith.divf %19, %20 : vector<8x128xf32>
    %22 = arith.truncf %21 : vector<8x128xf32> to vector<8x128xbf16>
    %c0_12 = arith.constant 0 : index
    %c0_13 = arith.constant 0 : index
    %23 = vector.load %arg6[%c0_12, %c0_13] : memref<128x128xbf16, #tpu.memory_space<vmem>>, vector<128x128xbf16>
    %cst_14 = arith.constant dense<0.000000e+00> : vector<8x128xf32>
    %24 = tpu.matmul %22, %23, %cst_14 {dimension_numbers = #tpu.dot_dimension_numbers<[1], [0], [0], [1], [0, 0, 1, 1], [], []>} : vector<8x128xbf16>, vector<128x128xbf16>, vector<8x128xf32> -> vector<8x128xf32>
    %c0_15 = arith.constant 0 : index
    %c0_16 = arith.constant 0 : index
    %25 = vector.load %arg7[%c0_15, %c0_16] : memref<1x128xf32, #tpu.memory_space<vmem>>, vector<1x128xf32>
    %26 = vector.broadcast %25 : vector<1x128xf32> to vector<8x128xf32>
    %27 = arith.addf %24, %26 : vector<8x128xf32>
    %28 = arith.negf %27 : vector<8x128xf32>
    %29 = math.exp %28 : vector<8x128xf32>
    %cst_17 = arith.constant 1.000000e+00 : f32
    %30 = vector.broadcast %cst_17 : f32 to vector<8x128xf32>
    %31 = arith.addf %30, %29 : vector<8x128xf32>
    %32 = arith.divf %30, %31 : vector<8x128xf32>
    %33 = arith.truncf %32 : vector<8x128xf32> to vector<8x128xbf16>
    %c0_18 = arith.constant 0 : index
    %c0_19 = arith.constant 0 : index
    %34 = vector.load %arg8[%c0_18, %c0_19] : memref<128x128xbf16, #tpu.memory_space<vmem>>, vector<128x128xbf16>
    %cst_20 = arith.constant dense<0.000000e+00> : vector<8x128xf32>
    %35 = tpu.matmul %33, %34, %cst_20 {dimension_numbers = #tpu.dot_dimension_numbers<[1], [0], [0], [1], [0, 0, 1, 1], [], []>} : vector<8x128xbf16>, vector<128x128xbf16>, vector<8x128xf32> -> vector<8x128xf32>
    %c0_21 = arith.constant 0 : index
    %c0_22 = arith.constant 0 : index
    %36 = vector.load %arg9[%c0_21, %c0_22] : memref<1x128xf32, #tpu.memory_space<vmem>>, vector<1x128xf32>
    %37 = vector.broadcast %36 : vector<1x128xf32> to vector<8x128xf32>
    %38 = arith.addf %35, %37 : vector<8x128xf32>
    %c0_23 = arith.constant 0 : index
    %c0_24 = arith.constant 0 : index
    %39 = vector.load %arg10[%c0_23, %c0_24] : memref<8x128xf32, #tpu.memory_space<vmem>>, vector<8x128xf32>
    tpu.vector_store %arg10[%c0_23, %c0_24], %38 {strides = array<i32>} : memref<8x128xf32, #tpu.memory_space<vmem>>, vector<8x128xf32>,
    return
  }
  func.func @transform_0(%arg0: i32) -> (i32, i32) {
    %c0_i32 = arith.constant 0 : i32
    %c0_i32_0 = arith.constant 0 : i32
    return %arg0, %c0_i32 : i32, i32
  }
  func.func @transform_1(%arg0: i32) -> (i32, i32) {
    %c0_i32 = arith.constant 0 : i32
    %c0_i32_0 = arith.constant 0 : i32
    %c0_i32_1 = arith.constant 0 : i32
    return %c0_i32, %c0_i32_0 : i32, i32
  }
  func.func @transform_2(%arg0: i32) -> (i32, i32) {
    %c0_i32 = arith.constant 0 : i32
    %c0_i32_0 = arith.constant 0 : i32
    %c0_i32_1 = arith.constant 0 : i32
    return %c0_i32, %c0_i32_0 : i32, i32
  }
  func.func @transform_3(%arg0: i32) -> (i32, i32) {
    %c0_i32 = arith.constant 0 : i32
    %c0_i32_0 = arith.constant 0 : i32
    %c0_i32_1 = arith.constant 0 : i32
    return %c0_i32, %c0_i32_0 : i32, i32
  }
  func.func @transform_4(%arg0: i32) -> (i32, i32) {
    %c0_i32 = arith.constant 0 : i32
    %c0_i32_0 = arith.constant 0 : i32
    %c0_i32_1 = arith.constant 0 : i32
    return %c0_i32, %c0_i32_0 : i32, i32
  }
  func.func @transform_5(%arg0: i32) -> (i32, i32) {
    %c0_i32 = arith.constant 0 : i32
    %c0_i32_0 = arith.constant 0 : i32
    %c0_i32_1 = arith.constant 0 : i32
    return %c0_i32, %c0_i32_0 : i32, i32
  }
  func.func @transform_6(%arg0: i32) -> (i32, i32) {
    %c0_i32 = arith.constant 0 : i32
    %c0_i32_0 = arith.constant 0 : i32
    %c0_i32_1 = arith.constant 0 : i32
    return %c0_i32, %c0_i32_0 : i32, i32
  }
  func.func @transform_7(%arg0: i32) -> (i32, i32) {
    %c0_i32 = arith.constant 0 : i32
    %c0_i32_0 = arith.constant 0 : i32
    %c0_i32_1 = arith.constant 0 : i32
    return %c0_i32, %c0_i32_0 : i32, i32
  }
  func.func @transform_8(%arg0: i32) -> (i32, i32) {
    %c0_i32 = arith.constant 0 : i32
    %c0_i32_0 = arith.constant 0 : i32
    %c0_i32_1 = arith.constant 0 : i32
    return %c0_i32, %c0_i32_0 : i32, i32
  }
  func.func @transform_9(%arg0: i32) -> (i32, i32) {
    %c0_i32 = arith.constant 0 : i32
    %c0_i32_0 = arith.constant 0 : i32
    return %arg0, %c0_i32 : i32, i32
  }
}

</mosaic_0001>

<bundles_post_ra>
// kernel: tpu_custom_call.1
= control target key start
LH: loop header
LB: loop body
LE: loop exit
PB: predicated region body
PF: predicated region fallthrough
CT: control target
= control target key end

     0   :  { %14 = vsyncpa [#allocation3], 0  ;;  %s1129_s0 = inlined_call_operand.hbm [shape: bf16[8,128], index: 0, kind: input, shape index: {}]   ;;  %s1130_s1 = inlined_call_operand.hbm [shape: bf16[128,128], index: 1, kind: input, shape index: {}]   ;;  %s1131_s2 = inlined_call_operand.vmem [shape: f32[1,128], index: 2, kind: input, shape index: {}]   ;;  %s1132_s3 = inlined_call_operand.hbm [shape: bf16[128,128], index: 3, kind: input, shape index: {}]   ;;  %s1133_s4 = inlined_call_operand.vmem [shape: f32[1,128], index: 4, kind: input, shape index: {}]   ;;  %s1134_s5 = inlined_call_operand.hbm [shape: bf16[128,128], index: 5, kind: input, shape index: {}]   ;;  %s1135_s6 = inlined_call_operand.vmem [shape: f32[1,128], index: 6, kind: input, shape index: {}]   ;;  %s1136_s7 = inlined_call_operand.hbm [shape: bf16[128,128], index: 7, kind: input, shape index: {}]   ;;  %s1137_s8 = inlined_call_operand.vmem [shape: f32[1,128], index: 8, kind: input, shape index: {}]   ;;  %s1138_s9 = inlined_call_operand.hbm [shape: f32[8,128], index: 9, kind: output, shape index: {}]  }
   0x1   :  { %15 = vsyncpa [#allocation6], 0 }
   0x2   :  { %16 = vsyncpa [#allocation9], 0 }
   0x3   :  { %17 = vsyncpa [#allocation4], 0  ;;  %s933_s30 = smov [#allocation5]   ;;  %s793_s13 = scalar_lea.hbm %s1130_s1, 1024 }
   0x4   :  { %s33_s10 = sshll.u32 %s933_s30, 4  ;;  %p794_p0 = scmp.ne.s32.totalorder %s1130_s1, %s793_s13  ;;  %s34_s10 = int_to_ptr.vmem [resolvable:$true] %s33_s10 }
   0x5   :  { %p797_p1 = scmp.lt.u32.totalorder %s793_s13, %s1130_s1 }
   0x7   :  { %p799_p2 = pnand %p797_p1, %p794_p0 }
   0x9   :  { %802 = shalt.err (!%p799_p2)
}
   0xa   :  { %s803_s18 = scalar_lea.vmem %s34_s10, 1024  ;;  %p808_p4 = scmp.lt.s32.totalorder %s34_s10, %s34_s10 }
   0xb   :  { %p804_p3 = scmp.ne.s32.totalorder %s34_s10, %s803_s18  ;;  %p809_p5 = scmp.lt.s32.totalorder %s803_s18, %s803_s18 }
   0xd   :  { %p810_p6 = por %p809_p5, %p808_p4 }
   0xf   :  { %p811_p7 = pnand %p810_p6, %p804_p3 }
  0x11   :  { %814 = shalt.err (!%p811_p7)
}
  0x12   :  { %s934_s19 = smov 64   ;;  %s935_s20 = smov 4  }
  0x13   :  { %39 = dma.hbm_to_vmem [thread:$0]  %s1130_s1, 1024, %s34_s10, [#allocation6], %s934_s19, %s934_s19, %s935_s20  }
  0x14   :  { %s936_s23 = smov [#allocation8]   ;;  %s937_s25 = smov [#allocation2]  }
  0x15   :  { %s61_s24 = sshll.u32 %s936_s23, 4  ;;  %s24_s26 = sshll.u32 %s937_s25, 4  ;;  %s62_s24 = int_to_ptr.vmem [resolvable:$true] %s61_s24  ;;  %s25_s26 = int_to_ptr.vmem [resolvable:$true] %s24_s26 }
  0x16   :  { %s815_s29 = scalar_lea.hbm %s1134_s5, 1024 }
  0x17   :  { %p816_p8 = scmp.ne.s32.totalorder %s1134_s5, %s815_s29  ;;  %p819_p9 = scmp.lt.u32.totalorder %s815_s29, %s1134_s5 }
  0x19   :  { %p821_p10 = pnand %p819_p9, %p816_p8 }
  0x1b   :  { %824 = shalt.err (!%p821_p10)
}
  0x1c   :  { %s825_s1 = scalar_lea.vmem %s62_s24, 1024  ;;  %p830_p12 = scmp.lt.s32.totalorder %s62_s24, %s62_s24 }
  0x1d   :  { %p826_p11 = scmp.ne.s32.totalorder %s62_s24, %s825_s1  ;;  %p831_p13 = scmp.lt.s32.totalorder %s825_s1, %s825_s1 }
  0x1f   :  { %p832_p0 = por %p831_p13, %p830_p12 }
  0x21   :  { %p833_p1 = pnand %p832_p0, %p826_p11 }
  0x23   :  { %836 = shalt.err (!%p833_p1)
}
  0x24   :  { %67 = dma.hbm_to_vmem [thread:$0]  %s1134_s5, 1024, %s62_s24, [#allocation9], %s934_s19, %s934_s19, %s935_s20  }
  0x25   :  { %s837_s17 = scalar_lea.hbm %s1129_s0, 64 }
  0x26   :  { %p838_p2 = scmp.ne.s32.totalorder %s1129_s0, %s837_s17  ;;  %p841_p3 = scmp.lt.u32.totalorder %s837_s17, %s1129_s0 }
  0x28   :  { %p843_p4 = pnand %p841_p3, %p838_p2 }
  0x2a   :  { %846 = shalt.err (!%p843_p4)
}
  0x2b   :  { %s847_s25 = scalar_lea.vmem %s25_s26, 64  ;;  %p852_p6 = scmp.lt.s32.totalorder %s25_s26, %s25_s26 }
  0x2c   :  { %p848_p5 = scmp.ne.s32.totalorder %s25_s26, %s847_s25  ;;  %p853_p7 = scmp.lt.s32.totalorder %s847_s25, %s847_s25 }
  0x2e   :  { %p854_p8 = por %p853_p7, %p852_p6 }
  0x30   :  { %p855_p9 = pnand %p854_p8, %p848_p5 }
  0x32   :  { %858 = shalt.err (!%p855_p9)
}
  0x33   :  { %27 = dma.hbm_to_vmem [thread:$0]  %s1129_s0, 64, %s25_s26, [#allocation3]  }
  0x34   :  { %s938_s27 = smov [#allocation7]   ;;  %s939_s29 = smov [#allocation10]  }
  0x35   :  { %s47_s28 = sshll.u32 %s938_s27, 4  ;;  %s75_s30 = sshll.u32 %s939_s29, 4  ;;  %s48_s28 = int_to_ptr.vmem [resolvable:$true] %s47_s28  ;;  %s76_s30 = int_to_ptr.vmem [resolvable:$true] %s75_s30 }
  0x36   :  { %s859_s13 = scalar_lea.hbm %s1132_s3, 1024 }
  0x37   :  { %p860_p10 = scmp.ne.s32.totalorder %s1132_s3, %s859_s13  ;;  %p863_p11 = scmp.lt.u32.totalorder %s859_s13, %s1132_s3 }
  0x39   :  { %p865_p12 = pnand %p863_p11, %p860_p10 }
  0x3b   :  { %868 = shalt.err (!%p865_p12)
}
  0x3c   :  { %s869_s0 = scalar_lea.vmem %s48_s28, 1024  ;;  %p874_p0 = scmp.lt.s32.totalorder %s48_s28, %s48_s28 }
  0x3d   :  { %p870_p13 = scmp.ne.s32.totalorder %s48_s28, %s869_s0  ;;  %p875_p1 = scmp.lt.s32.totalorder %s869_s0, %s869_s0 }
  0x3f   :  { %p876_p2 = por %p875_p1, %p874_p0 }
  0x41   :  { %p877_p3 = pnand %p876_p2, %p870_p13 }
  0x43   :  { %880 = shalt.err (!%p877_p3)
}
  0x44   :  { %53 = dma.hbm_to_vmem [thread:$0]  %s1132_s3, 1024, %s48_s28, [#allocation6], %s934_s19, %s934_s19, %s935_s20  }
  0x45   :  { %s881_s21 = scalar_lea.hbm %s1136_s7, 1024 }
  0x46   :  { %p882_p4 = scmp.ne.s32.totalorder %s1136_s7, %s881_s21  ;;  %p885_p5 = scmp.lt.u32.totalorder %s881_s21, %s1136_s7 }
  0x48   :  { %p887_p6 = pnand %p885_p5, %p882_p4 }
  0x4a   :  { %890 = shalt.err (!%p887_p6)
}
  0x4b   :  { %s891_s24 = scalar_lea.vmem %s76_s30, 1024  ;;  %p896_p8 = scmp.lt.s32.totalorder %s76_s30, %s76_s30 }
  0x4c   :  { %p892_p7 = scmp.ne.s32.totalorder %s76_s30, %s891_s24  ;;  %p897_p9 = scmp.lt.s32.totalorder %s891_s24, %s891_s24 }
  0x4e   :  { %p898_p10 = por %p897_p9, %p896_p8 }
  0x50   :  { %p899_p11 = pnand %p898_p10, %p892_p7 }
  0x52   :  { %902 = shalt.err (!%p899_p11)
}
  0x53   :  { %81 = dma.hbm_to_vmem [thread:$0]  %s1136_s7, 1024, %s76_s30, [#allocation9], %s934_s19, %s934_s19, %s935_s20  }
  0x54   :  { %925 = dma.done.wait [#allocation3], 64  }
  0x55   :  { %926 = vsyncadd [#allocation3], 4294967232 }
  0x56   :  { %927 = dma.done.wait [#allocation6], 2048  }
  0x57   :  { %928 = vsyncadd [#allocation6], 4294965248 }
  0x58   :  { %929 = dma.done.wait [#allocation9], 2048  }
  0x59   :  { %930 = vsyncadd [#allocation9], 4294965248  ;;  %v940_v0 = vmov 0.0   ;;  %vm941_vm0 = vmmov 0   ;;  %v749_v1 = vld [vmem:[#allocation5] sm:$0xff]   ;;  %v750_v2 = vld [vmem:[#allocation5 + $0x8] sm:$0xff]  }
  0x5a   :  { %659 = vmatprep.subr.bf16.mxu0 %v940_v0  ;;  %675 = vmatprep.mubr.msk.bf16.mxu0 %vm941_vm0, %v940_v0  ;;  %v751_v3 = vld [vmem:[#allocation5 + $0x10] sm:$0xff]   ;;  %v752_v4 = vld [vmem:[#allocation5 + $0x18] sm:$0xff]   ;;  %v753_v5 = vld [vmem:[#allocation5 + $0x20] sm:$0xff]   ;;  %s942_s11 = smov [#allocation11]  }
  0x5b   :  { %679 = vmatprep.subr.bf16.mxu1 %v940_v0  ;;  %695 = vmatprep.mubr.msk.bf16.mxu1 %vm941_vm0, %v940_v0  ;;  %v754_v6 = vld [vmem:[#allocation5 + $0x28] sm:$0xff]   ;;  %v755_v7 = vld [vmem:[#allocation5 + $0x30] sm:$0xff]   ;;  %v756_v8 = vld [vmem:[#allocation5 + $0x38] sm:$0xff]   ;;  %s573_s12 = sshll.u32 %s942_s11, 4  ;;  %s574_s12 = int_to_ptr.vmem [resolvable:$true] %s573_s12 }
  0x5c   :  { %660 = vmatpush3.bf16.msra.mxu0 %v749_v1  ;;  %v100_v9 = vld [vmem:[#allocation2] sm:$0xf]  ;;  %v757_v10 = vld [vmem:[#allocation7] sm:$0xff]   ;;  %v758_v11 = vld [vmem:[#allocation7 + $0x8] sm:$0xff]   ;;  %p908_p13 = scmp.lt.s32.totalorder %s574_s12, %s574_s12 }
  0x5d   :  { %661 = vmatprep.subr.bf16.mxu0 %v940_v0  ;;  %680 = vmatpush3.bf16.msra.mxu1 %v757_v10  ;;  %v759_v12 = vld [vmem:[#allocation7 + $0x10] sm:$0xff]   ;;  %v760_v13 = vld [vmem:[#allocation7 + $0x18] sm:$0xff]   ;;  %v761_v14 = vld [vmem:[#allocation7 + $0x20] sm:$0xff]  }
  0x5e   :  { %681 = vmatprep.subr.bf16.mxu1 %v940_v0  ;;  %v762_v15 = vld [vmem:[#allocation7 + $0x28] sm:$0xff]   ;;  %v763_v16 = vld [vmem:[#allocation7 + $0x30] sm:$0xff]   ;;  %v764_v17 = vld [vmem:[#allocation7 + $0x38] sm:$0xff]  }
  0x5f   :  { %v584_v18 = vld [vmem:[%s1131_s2] ss:$0 sm:$0xff]  ;;  %v765_v29 = vld [vmem:[#allocation8] sm:$0xff]   ;;  %v766_v30 = vld [vmem:[#allocation8 + $0x8] sm:$0xff]  }
  0x60   :  { %662 = vmatpush3.bf16.msra.mxu0 %v750_v2  ;;  %v767_v31 = vld [vmem:[#allocation8 + $0x10] sm:$0xff]   ;;  %v768_v32 = vld [vmem:[#allocation8 + $0x18] sm:$0xff]   ;;  %v769_v33 = vld [vmem:[#allocation8 + $0x20] sm:$0xff]  }
  0x61   :  { %663 = vmatprep.subr.bf16.mxu0 %v940_v0  ;;  %682 = vmatpush3.bf16.msra.mxu1 %v758_v11  ;;  %v770_v34 = vld [vmem:[#allocation8 + $0x28] sm:$0xff]   ;;  %v771_v35 = vld [vmem:[#allocation8 + $0x30] sm:$0xff]   ;;  %v772_v36 = vld [vmem:[#allocation8 + $0x38] sm:$0xff]  }
  0x62   :  { %683 = vmatprep.subr.bf16.mxu1 %v940_v0  ;;  %v594_v37 = vld [vmem:[%s1133_s4] ss:$0 sm:$0xff]  ;;  %v773_v48 = vld [vmem:[#allocation10] sm:$0xff]   ;;  %v774_v49 = vld [vmem:[#allocation10 + $0x8] sm:$0xff]  }
  0x63   :  { %v775_v50 = vld [vmem:[#allocation10 + $0x10] sm:$0xff]   ;;  %v776_v51 = vld [vmem:[#allocation10 + $0x18] sm:$0xff]   ;;  %v777_v52 = vld [vmem:[#allocation10 + $0x20] sm:$0xff]  }
  0x64   :  { %664 = vmatpush3.bf16.msra.mxu0 %v751_v3  ;;  %v778_v53 = vld [vmem:[#allocation10 + $0x28] sm:$0xff]   ;;  %v779_v54 = vld [vmem:[#allocation10 + $0x30] sm:$0xff]   ;;  %v780_v55 = vld [vmem:[#allocation10 + $0x38] sm:$0xff]  }
  0x65   :  { %665 = vmatprep.subr.bf16.mxu0 %v940_v0  ;;  %684 = vmatpush3.bf16.msra.mxu1 %v759_v12  ;;  %v604_v56 = vld [vmem:[%s1135_s6] ss:$0 sm:$0xff]  ;;  %s903_s6 = scalar_lea.vmem %s574_s12, 128 }
  0x66   :  { %685 = vmatprep.subr.bf16.mxu1 %v940_v0  ;;  %p904_p12 = scmp.ne.s32.totalorder %s574_s12, %s903_s6  ;;  %p909_p0 = scmp.lt.s32.totalorder %s903_s6, %s903_s6 }
  0x68   :  { %666 = vmatpush3.bf16.msra.mxu0 %v752_v4  ;;  %p910_p1 = por %p909_p0, %p908_p13 }
  0x69   :  { %667 = vmatprep.subr.bf16.mxu0 %v940_v0  ;;  %686 = vmatpush3.bf16.msra.mxu1 %v760_v13 }
  0x6a   :  { %687 = vmatprep.subr.bf16.mxu1 %v940_v0  ;;  %p911_p2 = pnand %p910_p1, %p904_p12 }
  0x6c   :  { %668 = vmatpush3.bf16.msra.mxu0 %v753_v5 }
  0x6d   :  { %669 = vmatprep.subr.bf16.mxu0 %v940_v0  ;;  %688 = vmatpush3.bf16.msra.mxu1 %v761_v14 }
  0x6e   :  { %689 = vmatprep.subr.bf16.mxu1 %v940_v0 }
  0x70   :  { %670 = vmatpush3.bf16.msra.mxu0 %v754_v6 }
  0x71   :  { %671 = vmatprep.subr.bf16.mxu0 %v940_v0  ;;  %690 = vmatpush3.bf16.msra.mxu1 %v762_v15 }
  0x72   :  { %691 = vmatprep.subr.bf16.mxu1 %v940_v0 }
  0x74   :  { %672 = vmatpush3.bf16.msra.mxu0 %v755_v7 }
  0x75   :  { %673 = vmatprep.subr.bf16.mxu0 %v940_v0  ;;  %692 = vmatpush3.bf16.msra.mxu1 %v763_v16 }
  0x76   :  { %693 = vmatprep.subr.bf16.mxu1 %v940_v0 }
  0x78   :  { %674 = vmatpush3.bf16.msra.mxu0 %v756_v8 }
  0x79   :  { %699 = vmatprep.subr.bf16.mxu0 %v940_v0  ;;  %694 = vmatpush3.bf16.msra.mxu1 %v764_v17 }
  0x7a   :  { %719 = vmatprep.subr.bf16.mxu1 %v940_v0 }
  0x7b   :  { %676 = vmatmul.mubr.bf16.vlgmr.msra.gmra.mrb[0].mxu0 %v100_v9 }
  0x7c   :  { %715 = vmatprep.mubr.msk.bf16.mxu0 %vm941_vm0, %v940_v0  ;;  %700 = vmatpush3.bf16.msra.mxu0 %v765_v29 }
  0x7d   :  { %701 = vmatprep.subr.bf16.mxu0 %v940_v0 }
  0x80   :  { %702 = vmatpush3.bf16.msra.mxu0 %v766_v30 }
  0x81   :  { %703 = vmatprep.subr.bf16.mxu0 %v940_v0 }
  0x84   :  { %704 = vmatpush3.bf16.msra.mxu0 %v767_v31 }
  0x85   :  { %705 = vmatprep.subr.bf16.mxu0 %v940_v0 }
  0x88   :  { %706 = vmatpush3.bf16.msra.mxu0 %v768_v32 }
  0x89   :  { %707 = vmatprep.subr.bf16.mxu0 %v940_v0 }
  0x8c   :  { %708 = vmatpush3.bf16.msra.mxu0 %v769_v33 }
  0x8d   :  { %709 = vmatprep.subr.bf16.mxu0 %v940_v0 }
  0x90   :  { %710 = vmatpush3.bf16.msra.mxu0 %v770_v34 }
  0x91   :  { %711 = vmatprep.subr.bf16.mxu0 %v940_v0 }
  0x94   :  { %712 = vmatpush3.bf16.msra.mxu0 %v771_v35 }
  0x95   :  { %713 = vmatprep.subr.bf16.mxu0 %v940_v0 }
  0x98   :  { %714 = vmatpush3.bf16.msra.mxu0 %v772_v36 }
 0x14e   :  { %v206_v19 = vpop.f32.mrb[0].mxu0 }
 0x14f   :  { %v207_v20 = vadd.f32 %v584_v18, %v206_v19  ;;  %v677_v21 = vpop.f32.mrb[1].mxu0 }
 0x150   :  { %v209_v22 = vpop.f32.mrb[2].mxu0 }
 0x151   :  { %v593_v23 = vmul.f32 -1.442695, %v207_v20  ;;  %v678_v24 = vpop.f32.mrb[3].mxu0 }
 0x153   :  { %781 = vpow2.f32 %v593_v23 }
 0x15d   :  { %v782_v25 = vpop.eup %781 }
 0x15e   :  { %v215_v26 = vadd.f32 1.0, %v782_v25 }
 0x160   :  { %783 = vrcp.f32 %v215_v26 }
 0x16a   :  { %v784_v27 = vpop.eup %783 }
 0x16b   :  { %v218_v28 = vpack.c.bf16 %v784_v27, %v784_v27 }
 0x16d   :  { %696 = vmatmul.mubr.bf16.vlgmr.msra.gmra.mrb[0].mxu1 %v218_v28 }
 0x16e   :  { %735 = vmatprep.mubr.msk.bf16.mxu1 %vm941_vm0, %v940_v0  ;;  %720 = vmatpush3.bf16.msra.mxu1 %v773_v48 }
 0x16f   :  { %721 = vmatprep.subr.bf16.mxu1 %v940_v0 }
 0x172   :  { %722 = vmatpush3.bf16.msra.mxu1 %v774_v49 }
 0x173   :  { %723 = vmatprep.subr.bf16.mxu1 %v940_v0 }
 0x176   :  { %724 = vmatpush3.bf16.msra.mxu1 %v775_v50 }
 0x177   :  { %725 = vmatprep.subr.bf16.mxu1 %v940_v0 }
 0x17a   :  { %726 = vmatpush3.bf16.msra.mxu1 %v776_v51 }
 0x17b   :  { %727 = vmatprep.subr.bf16.mxu1 %v940_v0 }
 0x17e   :  { %728 = vmatpush3.bf16.msra.mxu1 %v777_v52 }
 0x17f   :  { %729 = vmatprep.subr.bf16.mxu1 %v940_v0 }
 0x182   :  { %730 = vmatpush3.bf16.msra.mxu1 %v778_v53 }
 0x183   :  { %731 = vmatprep.subr.bf16.mxu1 %v940_v0 }
 0x186   :  { %732 = vmatpush3.bf16.msra.mxu1 %v779_v54 }
 0x187   :  { %733 = vmatprep.subr.bf16.mxu1 %v940_v0  ;;  %v614_v0 = vld [vmem:[%s1137_s8] ss:$0 sm:$0xff] }
 0x18a   :  { %734 = vmatpush3.bf16.msra.mxu1 %v780_v55 }
 0x240   :  { %v324_v38 = vpop.f32.mrb[0].mxu1 }
 0x241   :  { %v325_v39 = vadd.f32 %v594_v37, %v324_v38  ;;  %v697_v40 = vpop.f32.mrb[1].mxu1 }
 0x242   :  { %v327_v41 = vpop.f32.mrb[2].mxu1 }
 0x243   :  { %v603_v42 = vmul.f32 -1.442695, %v325_v39  ;;  %v698_v43 = vpop.f32.mrb[3].mxu1 }
 0x245   :  { %785 = vpow2.f32 %v603_v42 }
 0x24f   :  { %v786_v44 = vpop.eup %785 }
 0x250   :  { %v333_v45 = vadd.f32 1.0, %v786_v44 }
 0x252   :  { %787 = vrcp.f32 %v333_v45 }
 0x25c   :  { %v788_v46 = vpop.eup %787 }
 0x25d   :  { %v336_v47 = vpack.c.bf16 %v788_v46, %v788_v46 }
 0x25f   :  { %716 = vmatmul.mubr.bf16.vlgmr.msra.gmra.mrb[4].mxu0 %v336_v47 }
 0x332   :  { %v442_v57 = vpop.f32.mrb[4].mxu0 }
 0x333   :  { %v443_v58 = vadd.f32 %v604_v56, %v442_v57  ;;  %v717_v59 = vpop.f32.mrb[5].mxu0 }
 0x334   :  { %v445_v60 = vpop.f32.mrb[6].mxu0 }
 0x335   :  { %v613_v61 = vmul.f32 -1.442695, %v443_v58  ;;  %v718_v62 = vpop.f32.mrb[7].mxu0 }
 0x337   :  { %789 = vpow2.f32 %v613_v61 }
 0x341   :  { %v790_v63 = vpop.eup %789 }
 0x342   :  { %v451_v1 = vadd.f32 1.0, %v790_v63 }
 0x344   :  { %791 = vrcp.f32 %v451_v1 }
 0x34e   :  { %v792_v2 = vpop.eup %791 }
 0x34f   :  { %v454_v3 = vpack.c.bf16 %v792_v2, %v792_v2 }
 0x351   :  { %736 = vmatmul.mubr.bf16.vlgmr.msra.gmra.mrb[4].mxu1 %v454_v3 }
 0x424   :  { %v560_v4 = vpop.f32.mrb[4].mxu1 }
 0x425   :  { %v561_v5 = vadd.f32 %v614_v0, %v560_v4  ;;  %v737_v6 = vpop.f32.mrb[5].mxu1 }
 0x426   :  { %v563_v7 = vpop.f32.mrb[6].mxu1 }
 0x427   :  { %566 = vst [vmem:[#allocation11] sm:$0xff] %v561_v5  ;;  %v738_v8 = vpop.f32.mrb[7].mxu1 }
 0x428   :  { %914 = shalt.err (!%p911_p2)
}
 0x429   :  { %s915_s8 = scalar_lea.hbm %s1138_s9, 128 }
 0x42a   :  { %p916_p3 = scmp.ne.s32.totalorder %s1138_s9, %s915_s8  ;;  %p919_p4 = scmp.lt.u32.totalorder %s915_s8, %s1138_s9 }
 0x42c   :  { %p921_p5 = pnand %p919_p4, %p916_p3 }
 0x42e   :  { %924 = shalt.err (!%p921_p5)
}
 0x42f   :  { %576 = dma.vmem_to_hbm [thread:$0]  %s574_s12, 128, %s1138_s9, [#allocation4]  }
 0x430   :  { %931 = dma.done.wait [#allocation4], 128  }
 0x431   :  { %932 = vsyncadd [#allocation4], 4294967168 }
 0x432   :  { %580 = vsyncpa [#allocation3], 1 }
 0x433   :  { %581 = vsyncpa [#allocation6], 1 }
 0x434   :  { %582 = vsyncpa [#allocation9], 1 }
 0x435   :  { %583 = vsyncpa [#allocation4], 1 }

</bundles_post_ra>
